<compile_context>
chip_gen: v5e
topology: v5e:2x2
jax: 0.10.0
libtpu: 0.0.40
codegen_flags: <defaults>
</compile_context>

<pallas_src>
import jax
import jax.numpy as jnp
from jax import lax
from jax.experimental import pallas as pl
from jax.experimental.pallas import tpu as pltpu


def _default_act_dtype():
    """bf16 intermediates on v6e/v7x (native bf16 VPU, half the VMEM);
    keep the epilogue in f32 on v5e (no bf16 VPU)."""
    try:
        kind = jax.devices()[0].device_kind.lower()
    except Exception:
        return jnp.bfloat16
    if ("v5 lite" in kind) or ("v5e" in kind) or ("v5lite" in kind):
        return jnp.float32
    return jnp.bfloat16


def _make_mlp_kernel(compute_dtype, act_dtype):
    """Kernel body; activations live in (features, batch_tile) layout."""

    def mlp_kernel(x_ref,
                   w1_ref, t1_ref,
                   w2_ref, t2_ref,
                   w3_ref, t3_ref,
                   w4_ref, b4_ref,
                   o_ref):
        # x arrives in native (batch_tile, D_in) f32 layout (no wrapper
        # transpose/cast HBM pass).  Cast in-kernel; the NT dot_general
        # (contracting dim 1 of both operands) lands the result directly in
        # (features, batch) layout.
        x_b = x_ref[...].astype(compute_dtype)                    # (TB, D_in)

        # fc1 (+ folded bn1) -> relu              (dropout1 = identity, eval)
        h1 = lax.dot_general(w1_ref[...], x_b,
                             (((1,), (1,)), ((), ())),
                             preferred_element_type=jnp.float32)  # (128, TB)
        h1 = jnp.maximum(h1 + t1_ref[...], 0.0).astype(act_dtype)

        # fc2 (+ folded bn2) -> relu -> residual add with h1
        h2 = jnp.dot(w2_ref[...], h1.astype(compute_dtype),
                     preferred_element_type=jnp.float32)
        h2 = jnp.maximum(h2 + t2_ref[...], 0.0).astype(act_dtype) + h1

        # fc3 (+ folded bn3) -> relu
        h3 = jnp.dot(w3_ref[...], h2.astype(compute_dtype),
                     preferred_element_type=jnp.float32)
        h3 = jnp.maximum(h3 + t3_ref[...], 0.0)                   # (64, TB) f32

        # fc4 (64 -> 1): sublane reduction on the idle XLU; lane-dense
        # (1, TB) output store.  b4 is an SMEM scalar.
        o_ref[...] = (jnp.sum(h3 * w4_ref[...], axis=0, keepdims=True)
                      + b4_ref[0])                                # (1, TB) f32

    return mlp_kernel


def fold_params(raw_params, compute_dtype=jnp.bfloat16):
    """Fold eval-mode BatchNorm1d into the preceding Linear.

    bn(Wx + b) = (s*W) x + (s*b + shift),   s = gamma/sqrt(var+eps),
                                            shift = beta - mean*s.
    Weights stay in PyTorch (out, in) layout because the kernel works on
    transposed (features, batch) activations:  y^T = W x^T + t.
    """
    (w1, b1, bn1, w2, b2, bn2, w3, b3, bn3, w4, b4) = raw_params

    def fold(w, b, bn):
        gamma, beta, mean, var, eps = bn
        s = gamma / jnp.sqrt(var + eps)
        w_f = (w * s[:, None]).astype(compute_dtype)                   # (out, in)
        t_f = (s * b + (beta - mean * s)).astype(jnp.float32)[:, None]  # (out, 1)
        return w_f, t_f

    w1f, t1 = fold(w1, b1, bn1)
    w2f, t2 = fold(w2, b2, bn2)
    w3f, t3 = fold(w3, b3, bn3)
    w4c = w4.T.astype(jnp.float32)               # (64, 1) — f32 epilogue operand
    b4c = b4.astype(jnp.float32).reshape(1)      # (1,)    — SMEM scalar
    return (w1f, t1, w2f, t2, w3f, t3, w4c, b4c)


def neural_network_forward(x, raw_params, *, batch_tile=4096,
                           compute_dtype=jnp.bfloat16, act_dtype=None):
    """x: (B, D_in) f32; returns (B, 1) f32 — NeuralNetwork.forward (eval mode)."""
    if act_dtype is None:
        act_dtype = _default_act_dtype()
    x = x.astype(jnp.float32)
    B, D_in = x.shape
    (w1, t1, w2, t2, w3, t3, w4, b4) = fold_params(raw_params, compute_dtype)

    # Keep the contraction (feature) dim sublane-aligned.  Zero-padding is
    # exact; it only touches x when D_in is not a multiple of 8.
    d_pad = ((D_in + 7) // 8) * 8
    if d_pad != D_in:
        x = jnp.pad(x, ((0, 0), (0, d_pad - D_in)))
        w1 = jnp.pad(w1, ((0, 0), (0, d_pad - D_in)))

    assert batch_tile % 128 == 0, "batch_tile must be a multiple of 128"
    # Biggest lane tile the batch needs, capped by batch_tile.  Sweep the cap
    # in {2048, 4096, 8192}: per-grid-step overhead (~0.35 us) dominates small
    # tiles; working set at tb=4096 is ~12 MB, comfortably under the scoped
    # VMEM limit below on v5e/v6e/v7x.  A cap <= 8192 also keeps num_tiles>=2
    # for large B so v7x can shard the 'parallel' axis across its 2 TCs.
    tb = min(batch_tile, ((B + 127) // 128) * 128)
    num_tiles = pl.cdiv(B, tb)
    b_pad = num_tiles * tb
    if b_pad != B:
        # Ragged batch: zero-pad (per-column math, padded columns discarded).
        x = jnp.pad(x, ((0, b_pad - B), (0, 0)))

    def const2d(arr):
        # Constant index_map: the Pallas pipeliner detects the revisited block
        # and does NOT re-DMA weights every grid step.
        return pl.BlockSpec(arr.shape, lambda i: (0, 0))

    flops = 2 * B * (128 * d_pad + 128 * 128 + 64 * 128 + 64)
    bytes_accessed = (x.size * x.dtype.itemsize + b_pad * 4
                      + sum(int(a.size) * a.dtype.itemsize
                            for a in (w1, t1, w2, t2, w3, t3, w4, b4)))

    out_t = pl.pallas_call(
        _make_mlp_kernel(compute_dtype, act_dtype),
        out_shape=jax.ShapeDtypeStruct((1, b_pad), jnp.float32),
        grid_spec=pltpu.PrefetchScalarGridSpec(
            num_scalar_prefetch=0,
            grid=(num_tiles,),
            in_specs=[
                pl.BlockSpec((tb, d_pad), lambda i: (i, 0)),   # x, native layout
                const2d(w1), const2d(t1),
                const2d(w2), const2d(t2),
                const2d(w3), const2d(t3),
                const2d(w4),
                pl.BlockSpec(memory_space=pltpu.MemorySpace.SMEM),  # b4 scalar
            ],
            out_specs=pl.BlockSpec((1, tb), lambda i: (0, i)),
        ),
        compiler_params=pltpu.CompilerParams(
            dimension_semantics=("parallel",),
            # v5e's scoped default is only 16 MiB; 40 MiB unblocks tb up to
            # ~8K there while staying inside v7x's 64 MiB physical VMEM.
            vmem_limit_bytes=40 * 1024 * 1024),
        cost_estimate=pl.CostEstimate(flops=flops, transcendentals=0,
                                      bytes_accessed=bytes_accessed),
    )(x, w1, t1, w2, t2, w3, t3, w4, b4)

    return out_t[0, :B].reshape(B, 1)


def init_params(key, input_size):
    """Mirror NeuralNetwork.__init__ (PyTorch layout).

    Linear: kaiming_normal_(mode='fan_in', nonlinearity='relu') -> std=sqrt(2/fan_in),
    bias=0.  BatchNorm1d: gamma=1, beta=0, running_mean=0, running_var=1, eps=1e-5.
    """
    dims = [(input_size, 128), (128, 128), (128, 64), (64, 1)]
    keys = jax.random.split(key, len(dims))
    eps = 1e-5
    raw = []
    for idx, ((fan_in, fan_out), k) in enumerate(zip(dims, keys)):
        std = (2.0 / fan_in) ** 0.5
        w = std * jax.random.normal(k, (fan_out, fan_in), dtype=jnp.float32)
        b = jnp.zeros((fan_out,), dtype=jnp.float32)
        raw.append(w)
        raw.append(b)
        if idx < 3:
            gamma = jnp.ones((fan_out,), jnp.float32)
            beta = jnp.zeros((fan_out,), jnp.float32)
            mean = jnp.zeros((fan_out,), jnp.float32)
            var = jnp.ones((fan_out,), jnp.float32)
            raw.append((gamma, beta, mean, var, eps))
    return tuple(raw)


def reference_forward_torch(x, raw_params):
    """Pure-JAX f32 reference with the ORIGINAL PyTorch eval-mode semantics:
    unfused BatchNorm1d (running stats), dropout = identity, f32 math."""
    (w1, b1, bn1, w2, b2, bn2, w3, b3, bn3, w4, b4) = raw_params
    hp = jax.lax.Precision.HIGHEST

    def bn(h, p):
        gamma, beta, mean, var, eps = p
        return (h - mean) / jnp.sqrt(var + eps) * gamma + beta

    h1 = jnp.maximum(bn(jnp.dot(x, w1.T, precision=hp) + b1, bn1), 0.0)
    h2 = jnp.maximum(bn(jnp.dot(h1, w2.T, precision=hp) + b2, bn2), 0.0) + h1
    h3 = jnp.maximum(bn(jnp.dot(h2, w3.T, precision=hp) + b3, bn3), 0.0)
    return jnp.dot(h3, w4.T, precision=hp) + b4              # (B, 1)


def reference_forward_kernel_math(x, raw_params, compute_dtype=jnp.bfloat16,
                                  act_dtype=jnp.bfloat16):
    """Pure-JAX reference mirroring the kernel's exact math path
    (folded BN, bf16 MXU operands, f32 accumulation) — structural check."""
    (w1, t1, w2, t2, w3, t3, w4, b4) = fold_params(raw_params, compute_dtype)
    xb = x.astype(compute_dtype)
    h1 = lax.dot_general(w1, xb, (((1,), (1,)), ((), ())),
                         preferred_element_type=jnp.float32)
    h1 = jnp.maximum(h1 + t1, 0.0).astype(act_dtype)
    h2 = jnp.dot(w2, h1.astype(compute_dtype), preferred_element_type=jnp.float32)
    h2 = jnp.maximum(h2 + t2, 0.0).astype(act_dtype) + h1
    h3 = jnp.dot(w3, h2.astype(compute_dtype), preferred_element_type=jnp.float32)
    h3 = jnp.maximum(h3 + t3, 0.0)
    out = jnp.sum(h3 * w4, axis=0, keepdims=True) + b4[0]
    return out.T                                              # (B, 1)


if __name__ == "__main__":
    key = jax.random.PRNGKey(0)
    kx, kp = jax.random.split(key)

    batch = 16
    input_size = 32  # stand-in for X_train.shape[1]

    x = jax.random.normal(kx, (batch, input_size), dtype=jnp.float32)
    params = init_params(kp, input_size)
    act_dtype = _default_act_dtype()

    out = neural_network_forward(x, params, act_dtype=act_dtype)
    out = jax.block_until_ready(out)
    assert out.shape == (batch, 1)

    # Structural check: identical math path (folded BN, bf16 matmuls) in pure JAX.
    ref_k = reference_forward_kernel_math(x, params, act_dtype=act_dtype)
    assert jnp.allclose(out, ref_k, atol=1e-3, rtol=1e-3), (
        f"kernel vs matched-math reference: max abs err "
        f"{float(jnp.max(jnp.abs(out - ref_k)))}")

    # Numerical check against the original PyTorch f32 eval-mode semantics
    # (unfused BN, f32 dots); tolerance reflects bf16 operands / f32 accum.
    ref_f32 = reference_forward_torch(x, params)
    assert jnp.allclose(out, ref_f32, atol=1e-1, rtol=1e-1), (
        f"kernel vs f32 PyTorch-semantics reference: max abs err "
        f"{float(jnp.max(jnp.abs(out - ref_f32)))}")

    print("KERNEL_OK")
</pallas_src>

<mosaic_0001>
module attributes {stable_mosaic.version = 11 : i64} {
  func.func @mlp_kernel(%arg0: i32, %arg1: memref<128x32xf32, #tpu.memory_space<vmem>>, %arg2: memref<128x32xbf16, #tpu.memory_space<vmem>>, %arg3: memref<128x1xf32, #tpu.memory_space<vmem>>, %arg4: memref<128x128xbf16, #tpu.memory_space<vmem>>, %arg5: memref<128x1xf32, #tpu.memory_space<vmem>>, %arg6: memref<64x128xbf16, #tpu.memory_space<vmem>>, %arg7: memref<64x1xf32, #tpu.memory_space<vmem>>, %arg8: memref<64x1xf32, #tpu.memory_space<vmem>>, %arg9: memref<1xf32, #tpu.memory_space<smem>>, %arg10: memref<1x128xf32, #tpu.memory_space<vmem>>) attributes {dimension_semantics = [#tpu.dimension_semantics<parallel>], iteration_bounds = array<i64: 1>, scalar_prefetch = 0 : i64, scratch_operands = 0 : i64, tpu.core_type = #tpu.core_type<tc>, window_params = [{transform_indices = @transform_0, window_bounds = array<i64: 128, 32>}, {pipeline_mode = #tpu.pipeline_mode<synchronous>, transform_indices = @transform_1, window_bounds = array<i64: 128, 32>}, {pipeline_mode = #tpu.pipeline_mode<synchronous>, transform_indices = @transform_2, window_bounds = array<i64: 128, 1>}, {pipeline_mode = #tpu.pipeline_mode<synchronous>, transform_indices = @transform_3, window_bounds = array<i64: 128, 128>}, {pipeline_mode = #tpu.pipeline_mode<synchronous>, transform_indices = @transform_4, window_bounds = array<i64: 128, 1>}, {pipeline_mode = #tpu.pipeline_mode<synchronous>, transform_indices = @transform_5, window_bounds = array<i64: 64, 128>}, {pipeline_mode = #tpu.pipeline_mode<synchronous>, transform_indices = @transform_6, window_bounds = array<i64: 64, 1>}, {pipeline_mode = #tpu.pipeline_mode<synchronous>, transform_indices = @transform_7, window_bounds = array<i64: 64, 1>}, {transform_indices = @transform_8, window_bounds = array<i64: 1>}, {transform_indices = @transform_9, window_bounds = array<i64: 1, 128>}]} {
    %c0 = arith.constant 0 : index
    %c0_0 = arith.constant 0 : index
    %0 = vector.load %arg1[%c0, %c0_0] : memref<128x32xf32, #tpu.memory_space<vmem>>, vector<128x32xf32>
    %1 = arith.truncf %0 : vector<128x32xf32> to vector<128x32xbf16>
    %c0_1 = arith.constant 0 : index
    %c0_2 = arith.constant 0 : index
    %2 = vector.load %arg2[%c0_1, %c0_2] : memref<128x32xbf16, #tpu.memory_space<vmem>>, vector<128x32xbf16>
    %cst = arith.constant dense<0.000000e+00> : vector<128x128xf32>
    %3 = tpu.matmul %2, %1, %cst {dimension_numbers = #tpu.dot_dimension_numbers<[1], [1], [0], [0], [0, 0, 1, 0], [], []>} : vector<128x32xbf16>, vector<128x32xbf16>, vector<128x128xf32> -> vector<128x128xf32>
    %c0_3 = arith.constant 0 : index
    %c0_4 = arith.constant 0 : index
    %4 = vector.load %arg3[%c0_3, %c0_4] : memref<128x1xf32, #tpu.memory_space<vmem>>, vector<128x1xf32>
    %5 = vector.broadcast %4 : vector<128x1xf32> to vector<128x128xf32>
    %6 = arith.addf %3, %5 : vector<128x128xf32>
    %cst_5 = arith.constant 0.000000e+00 : f32
    %7 = vector.broadcast %cst_5 : f32 to vector<128x128xf32>
    %8 = arith.maximumf %6, %7 : vector<128x128xf32>
    %9 = arith.truncf %8 : vector<128x128xf32> to vector<128x128xbf16>
    %c0_6 = arith.constant 0 : index
    %c0_7 = arith.constant 0 : index
    %10 = vector.load %arg4[%c0_6, %c0_7] : memref<128x128xbf16, #tpu.memory_space<vmem>>, vector<128x128xbf16>
    %cst_8 = arith.constant dense<0.000000e+00> : vector<128x128xf32>
    %11 = tpu.matmul %10, %9, %cst_8 {dimension_numbers = #tpu.dot_dimension_numbers<[1], [0], [0], [1], [0, 0, 1, 1], [], []>} : vector<128x128xbf16>, vector<128x128xbf16>, vector<128x128xf32> -> vector<128x128xf32>
    %c0_9 = arith.constant 0 : index
    %c0_10 = arith.constant 0 : index
    %12 = vector.load %arg5[%c0_9, %c0_10] : memref<128x1xf32, #tpu.memory_space<vmem>>, vector<128x1xf32>
    %13 = vector.broadcast %12 : vector<128x1xf32> to vector<128x128xf32>
    %14 = arith.addf %11, %13 : vector<128x128xf32>
    %cst_11 = arith.constant 0.000000e+00 : f32
    %15 = vector.broadcast %cst_11 : f32 to vector<128x128xf32>
    %16 = arith.maximumf %14, %15 : vector<128x128xf32>
    %17 = arith.truncf %16 : vector<128x128xf32> to vector<128x128xbf16>
    %18 = arith.addf %17, %9 : vector<128x128xbf16>
    %c0_12 = arith.constant 0 : index
    %c0_13 = arith.constant 0 : index
    %19 = vector.load %arg6[%c0_12, %c0_13] : memref<64x128xbf16, #tpu.memory_space<vmem>>, vector<64x128xbf16>
    %cst_14 = arith.constant dense<0.000000e+00> : vector<64x128xf32>
    %20 = tpu.matmul %19, %18, %cst_14 {dimension_numbers = #tpu.dot_dimension_numbers<[1], [0], [0], [1], [0, 0, 1, 1], [], []>} : vector<64x128xbf16>, vector<128x128xbf16>, vector<64x128xf32> -> vector<64x128xf32>
    %c0_15 = arith.constant 0 : index
    %c0_16 = arith.constant 0 : index
    %21 = vector.load %arg7[%c0_15, %c0_16] : memref<64x1xf32, #tpu.memory_space<vmem>>, vector<64x1xf32>
    %22 = vector.broadcast %21 : vector<64x1xf32> to vector<64x128xf32>
    %23 = arith.addf %20, %22 : vector<64x128xf32>
    %cst_17 = arith.constant 0.000000e+00 : f32
    %24 = vector.broadcast %cst_17 : f32 to vector<64x128xf32>
    %25 = arith.maximumf %23, %24 : vector<64x128xf32>
    %c0_18 = arith.constant 0 : index
    %c0_19 = arith.constant 0 : index
    %26 = vector.load %arg8[%c0_18, %c0_19] : memref<64x1xf32, #tpu.memory_space<vmem>>, vector<64x1xf32>
    %27 = vector.broadcast %26 : vector<64x1xf32> to vector<64x128xf32>
    %28 = arith.mulf %25, %27 : vector<64x128xf32>
    %cst_20 = arith.constant dense<0.000000e+00> : vector<128xf32>
    %29 = vector.multi_reduction <add>, %28, %cst_20 [0] : vector<64x128xf32> to vector<128xf32>
    %30 = vector.shape_cast %29 : vector<128xf32> to vector<1x128xf32>
    %c0_21 = arith.constant 0 : index
    %31 = memref.load %arg9[%c0_21] : memref<1xf32, #tpu.memory_space<smem>>
    %32 = vector.broadcast %31 : f32 to vector<1x128xf32>
    %33 = arith.addf %30, %32 : vector<1x128xf32>
    %c0_22 = arith.constant 0 : index
    %c0_23 = arith.constant 0 : index
    %34 = vector.load %arg10[%c0_22, %c0_23] : memref<1x128xf32, #tpu.memory_space<vmem>>, vector<1x128xf32>
    tpu.vector_store %arg10[%c0_22, %c0_23], %33 {strides = array<i32>} : memref<1x128xf32, #tpu.memory_space<vmem>>, vector<1x128xf32>,
    return
  }
  func.func @transform_0(%arg0: i32) -> (i32, i32) {
    %c0_i32 = arith.constant 0 : i32
    %c0_i32_0 = arith.constant 0 : i32
    return %arg0, %c0_i32 : i32, i32
  }
  func.func @transform_1(%arg0: i32) -> (i32, i32) {
    %c0_i32 = arith.constant 0 : i32
    %c0_i32_0 = arith.constant 0 : i32
    %c0_i32_1 = arith.constant 0 : i32
    return %c0_i32, %c0_i32_0 : i32, i32
  }
  func.func @transform_2(%arg0: i32) -> (i32, i32) {
    %c0_i32 = arith.constant 0 : i32
    %c0_i32_0 = arith.constant 0 : i32
    %c0_i32_1 = arith.constant 0 : i32
    return %c0_i32, %c0_i32_0 : i32, i32
  }
  func.func @transform_3(%arg0: i32) -> (i32, i32) {
    %c0_i32 = arith.constant 0 : i32
    %c0_i32_0 = arith.constant 0 : i32
    %c0_i32_1 = arith.constant 0 : i32
    return %c0_i32, %c0_i32_0 : i32, i32
  }
  func.func @transform_4(%arg0: i32) -> (i32, i32) {
    %c0_i32 = arith.constant 0 : i32
    %c0_i32_0 = arith.constant 0 : i32
    %c0_i32_1 = arith.constant 0 : i32
    return %c0_i32, %c0_i32_0 : i32, i32
  }
  func.func @transform_5(%arg0: i32) -> (i32, i32) {
    %c0_i32 = arith.constant 0 : i32
    %c0_i32_0 = arith.constant 0 : i32
    %c0_i32_1 = arith.constant 0 : i32
    return %c0_i32, %c0_i32_0 : i32, i32
  }
  func.func @transform_6(%arg0: i32) -> (i32, i32) {
    %c0_i32 = arith.constant 0 : i32
    %c0_i32_0 = arith.constant 0 : i32
    %c0_i32_1 = arith.constant 0 : i32
    return %c0_i32, %c0_i32_0 : i32, i32
  }
  func.func @transform_7(%arg0: i32) -> (i32, i32) {
    %c0_i32 = arith.constant 0 : i32
    %c0_i32_0 = arith.constant 0 : i32
    %c0_i32_1 = arith.constant 0 : i32
    return %c0_i32, %c0_i32_0 : i32, i32
  }
  func.func @transform_8(%arg0: i32) -> i32 {
    %c0_i32 = arith.constant 0 : i32
    %c0_i32_0 = arith.constant 0 : i32
    return %c0_i32 : i32
  }
  func.func @transform_9(%arg0: i32) -> (i32, i32) {
    %c0_i32 = arith.constant 0 : i32
    %c0_i32_0 = arith.constant 0 : i32
    return %c0_i32, %arg0 : i32, i32
  }
}

</mosaic_0001>

<bundles_post_ra>
// kernel: tpu_custom_call.1
= control target key start
LH: loop header
LB: loop body
LE: loop exit
PB: predicated region body
PF: predicated region fallthrough
CT: control target
= control target key end

     0   :  { %vm210_vm0 = vcmask 261120   ;;  %v1046_v4 = vmov 0   ;;  %s1483_s0 = inlined_call_operand.vmem [shape: f32[128,32], index: 0, kind: input, shape index: {}]   ;;  %s1484_s1 = inlined_call_operand.vmem [shape: bf16[128,32], index: 1, kind: input, shape index: {}]   ;;  %s1485_s2 = inlined_call_operand.vmem [shape: f32[128,1], index: 2, kind: input, shape index: {}]   ;;  %s1486_s3 = inlined_call_operand.vmem [shape: bf16[128,128], index: 3, kind: input, shape index: {}]   ;;  %s1487_s4 = inlined_call_operand.vmem [shape: f32[128,1], index: 4, kind: input, shape index: {}]   ;;  %s1488_s5 = inlined_call_operand.vmem [shape: bf16[64,128], index: 5, kind: input, shape index: {}]   ;;  %s1489_s6 = inlined_call_operand.vmem [shape: f32[64,1], index: 6, kind: input, shape index: {}]   ;;  %s1490_s7 = inlined_call_operand.vmem [shape: f32[64,1], index: 7, kind: input, shape index: {}]   ;;  %s1491_s8 = inlined_call_operand.<no memory space> [shape: f32[1], index: 8, kind: input, shape index: {}]   ;;  %s1492_s9 = inlined_call_operand.hbm [shape: f32[1,128], index: 9, kind: output, shape index: {}]  }
   0x1   :  { %v48_v0 = vld [vmem:[%s1483_s0 + $0x70] sm:$0xff]  ;;  %v49_v1 = vld [vmem:[%s1483_s0 + $0x78] sm:$0xff]  ;;  %1017 = vset.pattern.permute.xlu0 %v1046_v4  ;;  %1018 = vset.pattern.permute.xlu1 %v1046_v4  ;;  %v86_v5 = vld [vmem:[%s1485_s2 + $0x60] sm:$0xff] }
   0x2   :  { %v88_v2 = vld [vmem:[%s1485_s2 + $0x70] sm:$0xff]  ;;  %v57_v3 = vpack.c.bf16 %v49_v1, %v48_v0  ;;  %152 = vperm.xlu1 %1018, %v86_v5   ;;  %v46_v6 = vld [vmem:[%s1483_s0 + $0x60] sm:$0xff]  ;;  %v47_v7 = vld [vmem:[%s1483_s0 + $0x68] sm:$0xff]  ;;  %1019 = vset.pattern.permute.xlu2 %v1046_v4 }
   0x3   :  { %162 = vperm.xlu0 %1017, %v88_v2   ;;  %v56_v9 = vpack.c.bf16 %v47_v7, %v46_v6  ;;  %v84_v10 = vld [vmem:[%s1485_s2 + $0x50] sm:$0xff]  ;;  %v89_v11 = vld [vmem:[%s1485_s2 + $0x78] sm:$0xff]  ;;  %v87_v12 = vld [vmem:[%s1485_s2 + $0x68] sm:$0xff] }
   0x4   :  { %v257_v8 = vsel %vm210_vm0, %v57_v3, 0  ;;  %142 = vperm.xlu2 %1019, %v84_v10  }
   0x5   :  { %259 = vmatpush.bf16.xpose.msra.mxu0 %v257_v8  ;;  %999 = vmatpush.bf16.xpose.msra.mxu3 %v257_v8 }
   0x6   :  { %15 = vsyncpa [#allocation4], 0  ;;  %v254_v13 = vsel %vm210_vm0, %v56_v9, 0  ;;  %v44_v14 = vld [vmem:[%s1483_s0 + $0x50] sm:$0xff]  ;;  %v45_v15 = vld [vmem:[%s1483_s0 + $0x58] sm:$0xff]  ;;  %s1047_s14 = smov [#allocation3]  }
   0x7   :  { %v85_v16 = vld [vmem:[%s1485_s2 + $0x58] sm:$0xff]  ;;  %v55_v17 = vpack.c.bf16 %v45_v15, %v44_v14  ;;  %v82_v18 = vld [vmem:[%s1485_s2 + $0x40] sm:$0xff]  ;;  %v83_v19 = vld [vmem:[%s1485_s2 + $0x48] sm:$0xff]  ;;  %s880_s15 = sshll.u32 %s1047_s14, 4  ;;  %s881_s15 = int_to_ptr.vmem [resolvable:$true] %s880_s15 }
   0x8   :  { %v42_v21 = vld [vmem:[%s1483_s0 + $0x40] sm:$0xff]  ;;  %v43_v22 = vld [vmem:[%s1483_s0 + $0x48] sm:$0xff]  ;;  %v80_v23 = vld [vmem:[%s1485_s2 + $0x30] sm:$0xff] }
   0x9   :  { %v251_v20 = vsel %vm210_vm0, %v55_v17, 0  ;;  %v54_v24 = vpack.c.bf16 %v43_v22, %v42_v21  ;;  %v81_v25 = vld [vmem:[%s1485_s2 + $0x38] sm:$0xff]  ;;  %v78_v26 = vld [vmem:[%s1485_s2 + $0x20] sm:$0xff]  ;;  %v40_v28 = vld [vmem:[%s1483_s0 + $0x30] sm:$0xff] }
   0xa   :  { %157 = vperm.xlu1 %1018, %v87_v12   ;;  %v41_v29 = vld [vmem:[%s1483_s0 + $0x38] sm:$0xff]  ;;  %v79_v30 = vld [vmem:[%s1485_s2 + $0x28] sm:$0xff]  ;;  %v76_v32 = vld [vmem:[%s1485_s2 + $0x10] sm:$0xff] }
   0xb   :  { %167 = vperm.xlu0 %1017, %v89_v11   ;;  %v248_v27 = vsel %vm210_vm0, %v54_v24, 0  ;;  %v53_v31 = vpack.c.bf16 %v41_v29, %v40_v28  ;;  %v77_v33 = vld [vmem:[%s1485_s2 + $0x18] sm:$0xff]  ;;  %v38_v35 = vld [vmem:[%s1483_s0 + $0x20] sm:$0xff]  ;;  %v39_v36 = vld [vmem:[%s1483_s0 + $0x28] sm:$0xff] }
   0xc   :  { %147 = vperm.xlu2 %1019, %v85_v16   ;;  %v74_v37 = vld [vmem:[%s1485_s2] sm:$0xff]  ;;  %v52_v38 = vpack.c.bf16 %v39_v36, %v38_v35  ;;  %v75_v39 = vld [vmem:[%s1485_s2 + $0x8] sm:$0xff]  ;;  %v370_v40 = vld [vmem:[%s1487_s4 + $0x70] sm:$0xff] }
   0xd   :  { %260 = vmatpush.bf16.xpose.msra.mxu0 %v254_v13  ;;  %1000 = vmatpush.bf16.xpose.msra.mxu3 %v254_v13  ;;  %v245_v34 = vsel %vm210_vm0, %v53_v31, 0  ;;  %v36_v42 = vld [vmem:[%s1483_s0 + $0x10] sm:$0xff]  ;;  %v37_v43 = vld [vmem:[%s1483_s0 + $0x18] sm:$0xff]  ;;  %v368_v46 = vld [vmem:[%s1487_s4 + $0x60] sm:$0xff] }
   0xe   :  { %v242_v41 = vsel %vm210_vm0, %v52_v38, 0  ;;  %v371_v44 = vld [vmem:[%s1487_s4 + $0x78] sm:$0xff]  ;;  %v51_v45 = vpack.c.bf16 %v37_v43, %v36_v42  ;;  %v369_v47 = vld [vmem:[%s1487_s4 + $0x68] sm:$0xff]  ;;  %v34_v49 = vld [vmem:[%s1483_s0] sm:$0xff] }
   0xf   :  { %v35_v50 = vld [vmem:[%s1483_s0 + $0x8] sm:$0xff]  ;;  %v366_v51 = vld [vmem:[%s1487_s4 + $0x50] sm:$0xff]  ;;  %v367_v53 = vld [vmem:[%s1487_s4 + $0x58] sm:$0xff] }
  0x10   :  { %v239_v48 = vsel %vm210_vm0, %v51_v45, 0  ;;  %v50_v52 = vpack.c.bf16 %v35_v50, %v34_v49  ;;  %v364_v54 = vld [vmem:[%s1487_s4 + $0x40] sm:$0xff]  ;;  %v365_v56 = vld [vmem:[%s1487_s4 + $0x48] sm:$0xff]  ;;  %v362_v59 = vld [vmem:[%s1487_s4 + $0x30] sm:$0xff] }
  0x11   :  { %v979_v57 = vld [vmem:[%s1484_s1] sm:$0xff]  ;;  %v363_v60 = vld [vmem:[%s1487_s4 + $0x38] sm:$0xff]  ;;  %v361_v62 = vld [vmem:[%s1487_s4 + $0x28] sm:$0xff] }
  0x12   :  { %137 = vperm.xlu1 %1018, %v83_v19   ;;  %v236_v55 = vsel %vm210_vm0, %v50_v52, 0  ;;  %v983_v58 = vld [vmem:[%s1484_s1 + $0x20] sm:$0xff]  ;;  %v358_v63 = vld [vmem:[%s1487_s4 + $0x10] sm:$0xff]  ;;  %v359_v0 = vld [vmem:[%s1487_s4 + $0x18] sm:$0xff] }
  0x13   :  { %132 = vperm.xlu0 %1017, %v82_v18   ;;  %v360_v61 = vld [vmem:[%s1487_s4 + $0x20] sm:$0xff]  ;;  %v980_v1 = vld [vmem:[%s1484_s1 + $0x8] sm:$0xff]  ;;  %v695_v7 = vld [vmem:[%s1489_s6 + $0x10] sm:$0xff] }
  0x14   :  { %122 = vperm.xlu2 %1019, %v80_v23   ;;  %v984_v2 = vld [vmem:[%s1484_s1 + $0x28] sm:$0xff]  ;;  %v356_v3 = vld [vmem:[%s1487_s4] sm:$0xff]  ;;  %v696_v8 = vld [vmem:[%s1489_s6 + $0x18] sm:$0xff] }
  0x15   :  { %261 = vmatpush.bf16.xpose.msra.mxu0 %v251_v20  ;;  %1001 = vmatpush.bf16.xpose.msra.mxu3 %v251_v20  ;;  %v357_v4 = vld [vmem:[%s1487_s4 + $0x8] sm:$0xff]  ;;  %v693_v5 = vld [vmem:[%s1489_s6] sm:$0xff]  ;;  %v981_v9 = vld [vmem:[%s1484_s1 + $0x10] sm:$0xff] }
  0x16   :  { %v694_v6 = vld [vmem:[%s1489_s6 + $0x8] sm:$0xff]  ;;  %v985_v10 = vld [vmem:[%s1484_s1 + $0x30] sm:$0xff]  ;;  %v697_v11 = vld [vmem:[%s1489_s6 + $0x20] sm:$0xff] }
  0x17   :  { %v802_v12 = vld [vmem:[%s1490_s7] sm:$0xff]  ;;  %v803_v13 = vld [vmem:[%s1490_s7 + $0x8] sm:$0xff]  ;;  %v804_v14 = vld [vmem:[%s1490_s7 + $0x10] sm:$0xff] }
  0x18   :  { %v698_v15 = vld [vmem:[%s1489_s6 + $0x28] sm:$0xff]  ;;  %v805_v16 = vld [vmem:[%s1490_s7 + $0x18] sm:$0xff]  ;;  %v699_v19 = vld [vmem:[%s1489_s6 + $0x30] sm:$0xff] }
  0x19   :  { %v982_v17 = vld [vmem:[%s1484_s1 + $0x18] sm:$0xff]  ;;  %v806_v20 = vld [vmem:[%s1490_s7 + $0x20] sm:$0xff]  ;;  %v807_v22 = vld [vmem:[%s1490_s7 + $0x28] sm:$0xff] }
  0x1a   :  { %112 = vperm.xlu1 %1018, %v78_v26   ;;  %v986_v18 = vld [vmem:[%s1484_s1 + $0x38] sm:$0xff]  ;;  %v808_v23 = vld [vmem:[%s1490_s7 + $0x30] sm:$0xff] }
  0x1b   :  { %127 = vperm.xlu0 %1017, %v81_v25   ;;  %v700_v21 = vld [vmem:[%s1489_s6 + $0x38] sm:$0xff] }
  0x1c   :  { %117 = vperm.xlu2 %1019, %v79_v30   ;;  %v809_v24 = vld [vmem:[%s1490_s7 + $0x38] sm:$0xff]  ;;  %s882_s7 = sshll.u32 %s1492_s9, 4  ;;  %s883_s7 = int_to_ptr.hbm [resolvable:$true] %s882_s7 }
  0x1d   :  { %262 = vmatpush.bf16.xpose.msra.mxu0 %v248_v27  ;;  %1002 = vmatpush.bf16.xpose.msra.mxu3 %v248_v27 }
  0x22   :  { %107 = vperm.xlu1 %1018, %v77_v33  }
  0x23   :  { %102 = vperm.xlu0 %1017, %v76_v32  }
  0x24   :  { %92 = vperm.xlu2 %1019, %v74_v37  }
  0x25   :  { %263 = vmatpush.bf16.xpose.msra.mxu0 %v245_v34  ;;  %1003 = vmatpush.bf16.xpose.msra.mxu3 %v245_v34 }
  0x2a   :  { %444 = vperm.xlu1 %1018, %v370_v40  }
  0x2b   :  { %97 = vperm.xlu0 %1017, %v75_v39  }
  0x2c   :  { %449 = vperm.xlu2 %1019, %v371_v44  }
  0x2d   :  { %264 = vmatpush.bf16.xpose.msra.mxu0 %v242_v41  ;;  %1004 = vmatpush.bf16.xpose.msra.mxu3 %v242_v41 }
  0x32   :  { %439 = vperm.xlu1 %1018, %v369_v47  }
  0x33   :  { %434 = vperm.xlu0 %1017, %v368_v46  }
  0x34   :  { %424 = vperm.xlu2 %1019, %v366_v51  }
  0x35   :  { %265 = vmatpush.bf16.xpose.msra.mxu0 %v239_v48  ;;  %1005 = vmatpush.bf16.xpose.msra.mxu3 %v239_v48 }
  0x3a   :  { %414 = vperm.xlu1 %1018, %v364_v54  }
  0x3b   :  { %429 = vperm.xlu0 %1017, %v367_v53  }
  0x3c   :  { %419 = vperm.xlu2 %1019, %v365_v56  }
  0x3d   :  { %266 = vmatpush.bf16.xpose.msra.mxu0 %v236_v55  ;;  %1006 = vmatpush.bf16.xpose.msra.mxu3 %v236_v55 }
  0x42   :  { %409 = vperm.xlu1 %1018, %v363_v60  }
  0x43   :  { %404 = vperm.xlu0 %1017, %v362_v59  }
  0x44   :  { %923 = vmatmul.msk.bf16.vlgmr.msra.gmra.mxu0 %vm210_vm0, %v979_v57  ;;  %927 = vmatmul.msk.bf16.vlgmr.msra.gmra.mxu3 %vm210_vm0, %v983_v58 }
  0x45   :  { %394 = vperm.xlu2 %1019, %v360_v61  }
  0x4a   :  { %384 = vperm.xlu1 %1018, %v358_v63  }
  0x4b   :  { %399 = vperm.xlu0 %1017, %v361_v62  }
  0x4d   :  { %389 = vperm.xlu2 %1019, %v359_v0  }
  0x52   :  { %379 = vperm.xlu1 %1018, %v357_v4  }
  0x53   :  { %374 = vperm.xlu0 %1017, %v356_v3  }
  0x54   :  { %924 = vmatmul.msk.bf16.gmra.mxu0 %vm210_vm0, %v980_v1  ;;  %928 = vmatmul.msk.bf16.gmra.mxu3 %vm210_vm0, %v984_v2 }
  0x55   :  { %703 = vperm.xlu2 %1019, %v693_v5  }
  0x5a   :  { %713 = vperm.xlu1 %1018, %v695_v7  }
  0x5b   :  { %708 = vperm.xlu0 %1017, %v694_v6  }
  0x5d   :  { %718 = vperm.xlu2 %1019, %v696_v8  }
  0x5e   :  { %v143_v37 = vpop.permute.xlu2 %142 }
  0x62   :  { %812 = vperm.xlu1 %1018, %v802_v12  }
  0x63   :  { %723 = vperm.xlu0 %1017, %v697_v11  }
  0x64   :  { %925 = vmatmul.msk.bf16.gmra.mxu0 %vm210_vm0, %v981_v9  ;;  %929 = vmatmul.msk.bf16.gmra.mxu3 %vm210_vm0, %v985_v10 }
  0x65   :  { %817 = vperm.xlu2 %1019, %v803_v13  }
  0x66   :  { %v148_v42 = vpop.permute.xlu2 %147 }
  0x6a   :  { %728 = vperm.xlu1 %1018, %v698_v15  }
  0x6b   :  { %822 = vperm.xlu0 %1017, %v804_v14  }
  0x6d   :  { %827 = vperm.xlu2 %1019, %v805_v16  }
  0x6e   :  { %v123_v49 = vpop.permute.xlu2 %122 }
  0x72   :  { %832 = vperm.xlu1 %1018, %v806_v20  }
  0x73   :  { %733 = vperm.xlu0 %1017, %v699_v19  }
  0x74   :  { %926 = vmatmul.msk.bf16.gmra.mxu0 %vm210_vm0, %v982_v17  ;;  %930 = vmatmul.msk.bf16.gmra.mxu3 %vm210_vm0, %v986_v18  ;;  %v153_v34 = vpop.permute.xlu1 %152 }
  0x75   :  { %738 = vperm.xlu2 %1019, %v700_v21   ;;  %v163_v33 = vpop.permute.xlu0 %162 }
  0x76   :  { %v118_v8 = vpop.permute.xlu2 %117 }
  0x7a   :  { %842 = vperm.xlu1 %1018, %v808_v23  }
  0x7b   :  { %837 = vperm.xlu0 %1017, %v807_v22  }
  0x7c   :  { %v158_v40 = vpop.permute.xlu1 %157 }
  0x7d   :  { %847 = vperm.xlu2 %1019, %v809_v24   ;;  %v168_v38 = vpop.permute.xlu0 %167 }
  0x84   :  { %v138_v45 = vpop.permute.xlu1 %137 }
  0x85   :  { %v133_v43 = vpop.permute.xlu0 %132 }
  0x8c   :  { %v113_v63 = vpop.permute.xlu1 %112 }
  0x8d   :  { %v128_v50 = vpop.permute.xlu0 %127 }
  0x95   :  { %v103_v11 = vpop.permute.xlu0 %102 }
  0xc1   :  { %v1330_v25 = vpop.f32.mrf.mxu0 }
  0xc7   :  { %v288_v26 = vpop.f32.mrf.mxu3 }
  0xc8   :  { %v289_v2 = vadd.f32 %v288_v26, %v133_v43  ;;  %v98_v43 = vpop.permute.xlu0 %97 }
  0xc9   :  { %v1332_v27 = vpop.f32.mrf.mxu0 }
  0xca   :  { %v316_v16 = vmax.f32 %v289_v2, 0.0 }
  0xcf   :  { %v290_v28 = vpop.f32.mrf.mxu3 }
  0xd0   :  { %v291_v61 = vadd.f32 %v290_v28, %v138_v45  ;;  %v1357_v28 = vpack.c.bf16 %v316_v16, %v316_v16 }
  0xd1   :  { %v1334_v29 = vpop.f32.mrf.mxu0 }
  0xd2   :  { %v317_v9 = vmax.f32 %v291_v61, 0.0 }
  0xd4   :  { %v1354_v19 = vpack.c.bf16 %v317_v9, %v317_v9  ;;  %v989_v9 = vld [vmem:[%s1486_s3 + $0x10] sm:$0xff] }
  0xd7   :  { %v293_v30 = vpop.f32.mrf.mxu3 }
  0xd8   :  { %v294_v57 = vadd.f32 %v293_v30, %v143_v37  ;;  %v108_v30 = vpop.permute.xlu1 %107 }
  0xd9   :  { %v1336_v31 = vpop.f32.mrf.mxu0 }
  0xda   :  { %v318_v4 = vmax.f32 %v294_v57, 0.0 }
  0xdc   :  { %v1351_v17 = vpack.c.bf16 %v318_v4, %v318_v4  ;;  %v987_v4 = vld [vmem:[%s1486_s3] sm:$0xff] }
  0xdf   :  { %v295_v32 = vpop.f32.mrf.mxu3 }
  0xe0   :  { %v296_v53 = vadd.f32 %v295_v32, %v148_v42  ;;  %v526_v32 = vunpack.c.l.b16 %v1351_v17  ;;  %v524_v42 = vunpack.c.l.b16 %v1357_v28 }
  0xe1   :  { %v278_v35 = vpop.f32.mrf.mxu0 }
  0xe2   :  { %v319_v62 = vmax.f32 %v296_v53, 0.0  ;;  %v279_v20 = vadd.f32 %v278_v35, %v113_v63  ;;  %v525_v35 = vunpack.c.l.b16 %v1354_v19 }
  0xe4   :  { %v1348_v10 = vpack.c.bf16 %v319_v62, %v319_v62 }
  0xe6   :  { %v527_v21 = vunpack.c.l.b16 %v1348_v10 }
  0xe7   :  { %v298_v36 = vpop.f32.mrf.mxu3 }
  0xe8   :  { %v299_v51 = vadd.f32 %v298_v36, %v153_v34  ;;  %v276_v34 = vadd.f32 %v1336_v31, %v108_v30  ;;  %v312_v36 = vmax.f32 %v279_v20, 0.0 }
  0xe9   :  { %v280_v41 = vpop.f32.mrf.mxu0 }
  0xea   :  { %v320_v58 = vmax.f32 %v299_v51, 0.0  ;;  %v281_v22 = vadd.f32 %v280_v41, %v118_v8  ;;  %v93_v41 = vpop.permute.xlu2 %92  ;;  %v311_v45 = vmax.f32 %v276_v34, 0.0  ;;  %v994_v8 = vld [vmem:[%s1486_s3 + $0x38] sm:$0xff] }
  0xec   :  { %v1344_v5 = vpack.c.bf16 %v320_v58, %v320_v58  ;;  %v313_v37 = vmax.f32 %v281_v22, 0.0  ;;  %v1378_v53 = vpack.c.bf16 %v311_v45, %v311_v45 }
  0xee   :  { %v528_v18 = vunpack.c.l.b16 %v1344_v5  ;;  %v519_v61 = vunpack.c.l.b16 %v1378_v53 }
  0xef   :  { %v300_v39 = vpop.f32.mrf.mxu3 }
  0xf0   :  { %v301_v48 = vadd.f32 %v300_v39, %v158_v40  ;;  %v537_v40 = vpack.c.b16 %v527_v21, %v526_v32 }
  0xf1   :  { %v283_v47 = vpop.f32.mrf.mxu0 }
  0xf2   :  { %v321_v55 = vmax.f32 %v301_v48, 0.0  ;;  %v284_v12 = vadd.f32 %v283_v47, %v123_v49  ;;  %v1370_v47 = vpack.c.bf16 %v312_v36, %v312_v36  ;;  %v1372_v48 = vpack.c.bf16 %v313_v37, %v313_v37  ;;  %v450_v22 = vpop.permute.xlu2 %449 }
  0xf4   :  { %v1340_v0 = vpack.c.bf16 %v321_v55, %v321_v55  ;;  %v314_v23 = vmax.f32 %v284_v12, 0.0  ;;  %v521_v55 = vunpack.c.l.b16 %v1372_v48  ;;  %v991_v12 = vld [vmem:[%s1486_s3 + $0x20] sm:$0xff] }
  0xf6   :  { %v529_v15 = vunpack.c.l.b16 %v1340_v0 }
  0xf7   :  { %v303_v44 = vpop.f32.mrf.mxu3 }
  0xf8   :  { %v304_v46 = vadd.f32 %v303_v44, %v163_v33  ;;  %v538_v26 = vpack.c.b16 %v529_v15, %v528_v18  ;;  %v274_v33 = vadd.f32 %v1334_v29, %v103_v11  ;;  %v269_v44 = vadd.f32 %v1330_v25, %v93_v41  ;;  %v990_v11 = vld [vmem:[%s1486_s3 + $0x18] sm:$0xff]  ;;  %v435_v15 = vpop.permute.xlu0 %434 }
  0xf9   :  { %v285_v3 = vpop.f32.mrf.mxu0  ;;  %v271_v29 = vadd.f32 %v1332_v27, %v98_v43 }
  0xfa   :  { %v322_v52 = vmax.f32 %v304_v46, 0.0  ;;  %v286_v13 = vadd.f32 %v285_v3, %v128_v50  ;;  %v310_v31 = vmax.f32 %v274_v33, 0.0  ;;  %v536_v46 = vpack.c.b16 %v525_v35, %v524_v42 }
  0xfb   :  { %v308_v51 = vmax.f32 %v269_v44, 0.0 }
  0xfc   :  { %v1338_v59 = vpack.c.bf16 %v322_v52, %v322_v52  ;;  %v315_v24 = vmax.f32 %v286_v13, 0.0  ;;  %v309_v52 = vmax.f32 %v271_v29, 0.0  ;;  %v1376_v25 = vpack.c.bf16 %v310_v31, %v310_v31  ;;  %v992_v13 = vld [vmem:[%s1486_s3 + $0x28] sm:$0xff] }
  0xfe   :  { %v530_v6 = vunpack.c.l.b16 %v1338_v59  ;;  %v1365_v39 = vpack.c.bf16 %v315_v24, %v315_v24  ;;  %v1382_v57 = vpack.c.bf16 %v309_v52, %v309_v52 }
  0xff   :  { %v305_v54 = vpop.f32.mrf.mxu3 }
 0x100   :  { %v306_v56 = vadd.f32 %v305_v54, %v168_v38  ;;  %v1363_v38 = vpack.c.bf16 %v314_v23, %v314_v23  ;;  %v523_v50 = vunpack.c.l.b16 %v1365_v39  ;;  %v520_v54 = vunpack.c.l.b16 %v1370_v47  ;;  %v1411_v18 = vpop.permute.xlu0 %429 }
 0x101   :  { %v517_v2 = vunpack.c.l.b16 %v1382_v57 }
 0x102   :  { %v323_v60 = vmax.f32 %v306_v56, 0.0  ;;  %v522_v49 = vunpack.c.l.b16 %v1363_v38  ;;  %v324_v56 = vpack.c.bf16 %v308_v51, %v308_v51  ;;  %v534_v58 = vpack.c.b16 %v521_v55, %v520_v54 }
 0x104   :  { %v1342_v1 = vpack.c.bf16 %v323_v60, %v323_v60  ;;  %v535_v27 = vpack.c.b16 %v523_v50, %v522_v49  ;;  %v518_v60 = vunpack.c.l.b16 %v1376_v25  ;;  %v516_v63 = vunpack.c.l.b16 %v324_v56 }
 0x105   :  { %v645_v41 = vunpack.c.l.bf16 %v324_v56 }
 0x106   :  { %v531_v7 = vunpack.c.l.b16 %v1342_v1  ;;  %v533_v62 = vpack.c.b16 %v519_v61, %v518_v60  ;;  %v532_v3 = vpack.c.b16 %v517_v2, %v516_v63 }
 0x108   :  { %v539_v14 = vpack.c.b16 %v531_v7, %v530_v6  ;;  %v993_v6 = vld [vmem:[%s1486_s3 + $0x30] sm:$0xff]  ;;  %v988_v7 = vld [vmem:[%s1486_s3 + $0x8] sm:$0xff]  ;;  %v1415_v21 = vpop.permute.xlu0 %404 }
 0x10a   :  { %548 = vmatpush.bf16.msra.mxu1 %v539_v14  ;;  %1007 = vmatpush.bf16.msra.mxu2 %v539_v14  ;;  %v445_v14 = vpop.permute.xlu1 %444 }
 0x10e   :  { %549 = vmatpush.bf16.msra.mxu1 %v538_v26  ;;  %1008 = vmatpush.bf16.msra.mxu2 %v538_v26  ;;  %v1421_v26 = vpop.permute.xlu2 %424 }
 0x110   :  { %v1419_v24 = vpop.permute.xlu0 %399 }
 0x112   :  { %550 = vmatpush.bf16.msra.mxu1 %v537_v40  ;;  %1009 = vmatpush.bf16.msra.mxu2 %v537_v40  ;;  %v440_v16 = vpop.permute.xlu1 %439 }
 0x116   :  { %551 = vmatpush.bf16.msra.mxu1 %v536_v46  ;;  %1010 = vmatpush.bf16.msra.mxu2 %v536_v46  ;;  %v1423_v35 = vpop.permute.xlu2 %419 }
 0x118   :  { %v375_v32 = vpop.permute.xlu0 %374 }
 0x11a   :  { %552 = vmatpush.bf16.msra.mxu1 %v535_v27  ;;  %1011 = vmatpush.bf16.msra.mxu2 %v535_v27  ;;  %v1413_v20 = vpop.permute.xlu1 %414  ;;  %v646_v27 = vunpack.c.l.bf16 %v1382_v57 }
 0x11e   :  { %553 = vmatpush.bf16.msra.mxu1 %v534_v58  ;;  %1012 = vmatpush.bf16.msra.mxu2 %v534_v58  ;;  %v395_v51 = vpop.permute.xlu2 %394 }
 0x122   :  { %554 = vmatpush.bf16.msra.mxu1 %v533_v62  ;;  %1013 = vmatpush.bf16.msra.mxu2 %v533_v62  ;;  %v1417_v23 = vpop.permute.xlu1 %409 }
 0x126   :  { %555 = vmatpush.bf16.msra.mxu1 %v532_v3  ;;  %1014 = vmatpush.bf16.msra.mxu2 %v532_v3 }
 0x129   :  { %556 = vmatmul.bf16.vlgmr.msra.gmra.mxu1 %v987_v4  ;;  %586 = vmatmul.bf16.vlgmr.msra.gmra.mxu2 %v993_v6  ;;  %v657_v6 = vunpack.c.l.bf16 %v1344_v5 }
 0x12a   :  { %v385_v30 = vpop.permute.xlu1 %384 }
 0x132   :  { %v380_v44 = vpop.permute.xlu1 %379 }
 0x139   :  { %561 = vmatmul.bf16.gmra.mxu1 %v988_v7  ;;  %591 = vmatmul.bf16.gmra.mxu2 %v994_v8  ;;  %v658_v7 = vunpack.c.l.bf16 %v1340_v0  ;;  %v648_v0 = vunpack.c.l.bf16 %v1378_v53 }
 0x149   :  { %566 = vmatmul.bf16.gmra.mxu1 %v989_v9  ;;  %v647_v9 = vunpack.c.l.bf16 %v1376_v25 }
 0x159   :  { %571 = vmatmul.bf16.gmra.mxu1 %v990_v11 }
 0x169   :  { %576 = vmatmul.bf16.gmra.mxu1 %v991_v12 }
 0x179   :  { %581 = vmatmul.bf16.gmra.mxu1 %v992_v13 }
 0x1a6   :  { %v557_v33 = vpop.f32.mrf.mxu1 }
 0x1a7   :  { %v558_v34 = vadd.f32 %v557_v33, %v375_v32 }
 0x1a9   :  { %v597_v36 = vmax.f32 %v558_v34, 0.0 }
 0x1ab   :  { %v613_v37 = vpack.c.bf16 %v597_v36, %v597_v36 }
 0x1ac   :  { %v587_v40 = vpop.f32.mrf.mxu2 }
 0x1ad   :  { %v629_v42 = vunpack.c.l.bf16 %v613_v37  ;;  %v588_v43 = vadd.f32 %v587_v40, %v435_v15 }
 0x1ae   :  { %v559_v29 = vpop.f32.mrf.mxu1 }
 0x1af   :  { %v560_v31 = vadd.f32 %v559_v29, %v380_v44  ;;  %v1425_v45 = vadd.f32 %v645_v41, %v629_v42  ;;  %v609_v46 = vmax.f32 %v588_v43, 0.0 }
 0x1b1   :  { %v598_v49 = vmax.f32 %v560_v31, 0.0  ;;  %v625_v54 = vpack.c.bf16 %v609_v46, %v609_v46 }
 0x1b3   :  { %v614_v50 = vpack.c.bf16 %v598_v49, %v598_v49  ;;  %v641_v63 = vunpack.c.l.bf16 %v625_v54  ;;  %v660_v54 = vunpack.c.l.bf16 %v1342_v1 }
 0x1b4   :  { %v589_v52 = vpop.f32.mrf.mxu2 }
 0x1b5   :  { %v630_v55 = vunpack.c.l.bf16 %v614_v50  ;;  %v590_v58 = vadd.f32 %v589_v52, %v440_v16  ;;  %v673_v15 = vadd.f32 %v657_v6, %v641_v63 }
 0x1b6   :  { %v562_v60 = vpop.f32.mrf.mxu1 }
 0x1b7   :  { %v610_v61 = vmax.f32 %v590_v58, 0.0  ;;  %v563_v56 = vadd.f32 %v562_v60, %v385_v30  ;;  %v1428_v62 = vadd.f32 %v646_v27, %v630_v55  ;;  %v390_v30 = vpop.permute.xlu2 %389  ;;  %v659_v27 = vunpack.c.l.bf16 %v1338_v59 }
 0x1b8   :  { %v649_v58 = vunpack.c.l.bf16 %v1370_v47 }
 0x1b9   :  { %v626_v2 = vpack.c.bf16 %v610_v61, %v610_v61  ;;  %v599_v3 = vmax.f32 %v563_v56, 0.0  ;;  %v677_v4 = vpack.c.bf16 %v1428_v62, %v1425_v45  ;;  %v709_v62 = vpop.permute.xlu0 %708 }
 0x1bb   :  { %v642_v8 = vunpack.c.l.bf16 %v626_v2  ;;  %v615_v57 = vpack.c.bf16 %v599_v3, %v599_v3 }
 0x1bc   :  { %v592_v11 = vpop.f32.mrf.mxu2 }
 0x1bd   :  { %v631_v12 = vunpack.c.l.bf16 %v615_v57  ;;  %v593_v13 = vadd.f32 %v592_v11, %v445_v14  ;;  %v674_v16 = vadd.f32 %v658_v7, %v642_v8  ;;  %v650_v7 = vunpack.c.l.bf16 %v1372_v48 }
 0x1be   :  { %v564_v32 = vpop.f32.mrf.mxu1 }
 0x1bf   :  { %v565_v33 = vadd.f32 %v564_v32, %v390_v30  ;;  %v683_v34 = vpack.c.bf16 %v674_v16, %v673_v15  ;;  %v1435_v36 = vadd.f32 %v647_v9, %v631_v12  ;;  %v611_v37 = vmax.f32 %v593_v13, 0.0  ;;  %v704_v45 = vpop.permute.xlu2 %703 }
 0x1c0   :  { %v651_v30 = vunpack.c.l.bf16 %v1363_v38  ;;  %v652_v32 = vunpack.c.l.bf16 %v1365_v39  ;;  %v654_v38 = vunpack.c.l.bf16 %v1354_v19 }
 0x1c1   :  { %v600_v40 = vmax.f32 %v565_v33, 0.0  ;;  %v627_v42 = vpack.c.bf16 %v611_v37, %v611_v37 }
 0x1c3   :  { %v616_v5 = vpack.c.bf16 %v600_v40, %v600_v40  ;;  %v643_v46 = vunpack.c.l.bf16 %v627_v42 }
 0x1c4   :  { %v594_v41 = vpop.f32.mrf.mxu2 }
 0x1c5   :  { %v632_v43 = vunpack.c.l.bf16 %v616_v5  ;;  %v595_v25 = vadd.f32 %v594_v41, %v450_v22  ;;  %v675_v60 = vadd.f32 %v659_v27, %v643_v46 }
 0x1c6   :  { %v567_v44 = vpop.f32.mrf.mxu1 }
 0x1c7   :  { %v612_v29 = vmax.f32 %v595_v25, 0.0  ;;  %v568_v14 = vadd.f32 %v567_v44, %v395_v51  ;;  %v1438_v31 = vadd.f32 %v648_v0, %v632_v43  ;;  %v653_v44 = vunpack.c.l.bf16 %v1357_v28 }
 0x1c8   :  { %v656_v28 = vunpack.c.l.bf16 %v1348_v10  ;;  %v996_v10 = vld [vmem:[%s1488_s5 + $0x8] sm:$0xff] }
 0x1c9   :  { %v628_v49 = vpack.c.bf16 %v612_v29, %v612_v29  ;;  %v601_v50 = vmax.f32 %v568_v14, 0.0  ;;  %v678_v52 = vpack.c.bf16 %v1438_v31, %v1435_v36 }
 0x1cb   :  { %v644_v55 = vunpack.c.l.bf16 %v628_v49  ;;  %v617_v53 = vpack.c.bf16 %v601_v50, %v601_v50 }
 0x1cd   :  { %v633_v22 = vunpack.c.l.bf16 %v617_v53  ;;  %v676_v61 = vadd.f32 %v660_v54, %v644_v55 }
 0x1ce   :  { %v569_v51 = vpop.f32.mrf.mxu1 }
 0x1cf   :  { %v570_v56 = vadd.f32 %v569_v51, %v1419_v24  ;;  %v684_v63 = vpack.c.bf16 %v676_v61, %v675_v60  ;;  %v665_v2 = vadd.f32 %v649_v58, %v633_v22  ;;  %v655_v22 = vunpack.c.l.bf16 %v1351_v17  ;;  %v997_v17 = vld [vmem:[%s1488_s5 + $0x10] sm:$0xff] }
 0x1d1   :  { %v602_v3 = vmax.f32 %v570_v56, 0.0  ;;  %765 = vmatpush.bf16.msrb.mxu2 %v684_v63  ;;  %v719_v56 = vpop.permute.xlu2 %718  ;;  %v724_v63 = vpop.permute.xlu0 %723 }
 0x1d3   :  { %v618_v6 = vpack.c.bf16 %v602_v3, %v602_v3 }
 0x1d5   :  { %v634_v59 = vunpack.c.l.bf16 %v618_v6  ;;  %766 = vmatpush.bf16.msrb.mxu2 %v683_v34 }
 0x1d6   :  { %v572_v1 = vpop.f32.mrf.mxu1 }
 0x1d7   :  { %v573_v8 = vadd.f32 %v572_v1, %v1415_v21  ;;  %v666_v57 = vadd.f32 %v650_v7, %v634_v59 }
 0x1d9   :  { %v679_v47 = vpack.c.bf16 %v666_v57, %v665_v2  ;;  %v603_v9 = vmax.f32 %v573_v8, 0.0  ;;  %v818_v6 = vpop.permute.xlu2 %817  ;;  %v823_v59 = vpop.permute.xlu0 %822 }
 0x1db   :  { %v619_v12 = vpack.c.bf16 %v603_v9, %v603_v9 }
 0x1dd   :  { %v635_v15 = vunpack.c.l.bf16 %v619_v12 }
 0x1de   :  { %v574_v11 = vpop.f32.mrf.mxu1 }
 0x1df   :  { %v575_v13 = vadd.f32 %v574_v11, %v1417_v23  ;;  %v667_v37 = vadd.f32 %v651_v30, %v635_v15 }
 0x1e1   :  { %v604_v24 = vmax.f32 %v575_v13, 0.0  ;;  %v828_v57 = vpop.permute.xlu2 %827 }
 0x1e3   :  { %v620_v16 = vpack.c.bf16 %v604_v24, %v604_v24  ;;  %v734_v24 = vpop.permute.xlu0 %733 }
 0x1e5   :  { %v636_v48 = vunpack.c.l.bf16 %v620_v16 }
 0x1e6   :  { %v577_v33 = vpop.f32.mrf.mxu1 }
 0x1e7   :  { %v578_v34 = vadd.f32 %v577_v33, %v1413_v20  ;;  %v668_v21 = vadd.f32 %v652_v32, %v636_v48 }
 0x1e9   :  { %v680_v40 = vpack.c.bf16 %v668_v21, %v667_v37  ;;  %v605_v5 = vmax.f32 %v578_v34, 0.0 }
 0x1eb   :  { %v621_v0 = vpack.c.bf16 %v605_v5, %v605_v5 }
 0x1ed   :  { %v637_v43 = vunpack.c.l.bf16 %v621_v0  ;;  %v739_v0 = vpop.permute.xlu2 %738 }
 0x1ee   :  { %v579_v41 = vpop.f32.mrf.mxu1 }
 0x1ef   :  { %v580_v42 = vadd.f32 %v579_v41, %v1423_v35  ;;  %v669_v20 = vadd.f32 %v653_v44, %v637_v43 }
 0x1f1   :  { %v606_v23 = vmax.f32 %v580_v42, 0.0 }
 0x1f3   :  { %v622_v25 = vpack.c.bf16 %v606_v23, %v606_v23 }
 0x1f5   :  { %v638_v39 = vunpack.c.l.bf16 %v622_v25 }
 0x1f6   :  { %v582_v29 = vpop.f32.mrf.mxu1 }
 0x1f7   :  { %v583_v14 = vadd.f32 %v582_v29, %v1421_v26  ;;  %v670_v46 = vadd.f32 %v654_v38, %v638_v39  ;;  %v998_v26 = vld [vmem:[%s1488_s5 + $0x18] sm:$0xff]  ;;  %v838_v39 = vpop.permute.xlu0 %837 }
 0x1f9   :  { %v681_v49 = vpack.c.bf16 %v670_v46, %v669_v20  ;;  %v607_v50 = vmax.f32 %v583_v14, 0.0 }
 0x1fb   :  { %v623_v54 = vpack.c.bf16 %v607_v50, %v607_v50 }
 0x1fd   :  { %v639_v53 = vunpack.c.l.bf16 %v623_v54 }
 0x1fe   :  { %v584_v27 = vpop.f32.mrf.mxu1 }
 0x1ff   :  { %v585_v55 = vadd.f32 %v584_v27, %v1411_v18  ;;  %v671_v60 = vadd.f32 %v655_v22, %v639_v53  ;;  %v995_v18 = vld [vmem:[%s1488_s5] sm:$0xff] }
 0x201   :  { %v608_v35 = vmax.f32 %v585_v55, 0.0 }
 0x203   :  { %v624_v58 = vpack.c.bf16 %v608_v35, %v608_v35  ;;  %v848_v35 = vpop.permute.xlu2 %847 }
 0x205   :  { %v640_v19 = vunpack.c.l.bf16 %v624_v58 }
 0x207   :  { %v672_v61 = vadd.f32 %v656_v28, %v640_v19 }
 0x209   :  { %v682_v51 = vpack.c.bf16 %v672_v61, %v671_v60 }
 0x20b   :  { %767 = vmatpush.bf16.msrb.mxu2 %v682_v51 }
 0x20f   :  { %768 = vmatpush.bf16.msrb.mxu2 %v681_v49 }
 0x213   :  { %769 = vmatpush.bf16.msrb.mxu2 %v680_v40 }
 0x217   :  { %770 = vmatpush.bf16.msrb.mxu2 %v679_v47 }
 0x21b   :  { %771 = vmatpush.bf16.msrb.mxu2 %v678_v52 }
 0x21f   :  { %772 = vmatpush.bf16.msrb.mxu2 %v677_v4  ;;  %v714_v4 = vpop.permute.xlu1 %713 }
 0x222   :  { %773 = vmatmul.bf16.vlgmr.msrb.gmra.mxu2 %v995_v18  ;;  %v872_v18 = vstv %s1491_s8 }
 0x227   :  { %v813_v3 = vpop.permute.xlu1 %812 }
 0x22f   :  { %v729_v1 = vpop.permute.xlu1 %728 }
 0x232   :  { %778 = vmatmul.bf16.gmra.mxu2 %v996_v10 }
 0x237   :  { %v833_v32 = vpop.permute.xlu1 %832 }
 0x23f   :  { %v843_v20 = vpop.permute.xlu1 %842 }
 0x242   :  { %783 = vmatmul.bf16.gmra.mxu2 %v997_v17 }
 0x252   :  { %788 = vmatmul.bf16.gmra.mxu2 %v998_v26 }
 0x2a5   :  { %v774_v36 = vpop.f32.mrf.mxu2 }
 0x2a6   :  { %v775_v9 = vadd.f32 %v774_v36, %v704_v45 }
 0x2a8   :  { %v794_v15 = vmax.f32 %v775_v9, 0.0 }
 0x2aa   :  { %v850_v21 = vmul.f32 %v813_v3, %v794_v15 }
 0x2ad   :  { %v776_v31 = vpop.f32.mrf.mxu2 }
 0x2ae   :  { %v777_v8 = vadd.f32 %v776_v31, %v709_v62 }
 0x2b0   :  { %v795_v12 = vmax.f32 %v777_v8, 0.0 }
 0x2b2   :  { %v851_v48 = vmul.f32 %v818_v6, %v795_v12 }
 0x2b4   :  { %v858_v42 = vadd.f32 %v851_v48, %v850_v21 }
 0x2b5   :  { %v779_v52 = vpop.f32.mrf.mxu2 }
 0x2b6   :  { %v780_v11 = vadd.f32 %v779_v52, %v714_v4 }
 0x2b8   :  { %v796_v16 = vmax.f32 %v780_v11, 0.0 }
 0x2ba   :  { %v852_v40 = vmul.f32 %v823_v59, %v796_v16 }
 0x2bc   :  { %v859_v25 = vadd.f32 %v858_v42, %v852_v40 }
 0x2bd   :  { %v781_v2 = vpop.f32.mrf.mxu2 }
 0x2be   :  { %v782_v13 = vadd.f32 %v781_v2, %v719_v56 }
 0x2c0   :  { %v797_v33 = vmax.f32 %v782_v13, 0.0 }
 0x2c2   :  { %v853_v23 = vmul.f32 %v828_v57, %v797_v33 }
 0x2c4   :  { %v860_v29 = vadd.f32 %v859_v25, %v853_v23 }
 0x2c5   :  { %v784_v7 = vpop.f32.mrf.mxu2 }
 0x2c6   :  { %v785_v30 = vadd.f32 %v784_v7, %v724_v63 }
 0x2c8   :  { %v798_v5 = vmax.f32 %v785_v30, 0.0 }
 0x2ca   :  { %v854_v44 = vmul.f32 %v833_v32, %v798_v5 }
 0x2cc   :  { %v861_v49 = vadd.f32 %v860_v29, %v854_v44 }
 0x2cd   :  { %v786_v47 = vpop.f32.mrf.mxu2 }
 0x2ce   :  { %v787_v34 = vadd.f32 %v786_v47, %v729_v1 }
 0x2d0   :  { %v799_v43 = vmax.f32 %v787_v34, 0.0 }
 0x2d2   :  { %v855_v14 = vmul.f32 %v838_v39, %v799_v43 }
 0x2d4   :  { %v862_v54 = vadd.f32 %v861_v49, %v855_v14 }
 0x2d5   :  { %v789_v37 = vpop.f32.mrf.mxu2 }
 0x2d6   :  { %v790_v41 = vadd.f32 %v789_v37, %v734_v24 }
 0x2d8   :  { %v800_v38 = vmax.f32 %v790_v41, 0.0 }
 0x2da   :  { %v856_v50 = vmul.f32 %v843_v20, %v800_v38 }
 0x2dc   :  { %v863_v53 = vadd.f32 %v862_v54, %v856_v50 }
 0x2dd   :  { %v791_v46 = vpop.f32.mrf.mxu2 }
 0x2de   :  { %v792_v27 = vadd.f32 %v791_v46, %v739_v0 }
 0x2e0   :  { %v801_v55 = vmax.f32 %v792_v27, 0.0 }
 0x2e2   :  { %v857_v58 = vmul.f32 %v848_v35, %v801_v55 }
 0x2e4   :  { %v864_v22 = vadd.f32 %v863_v53, %v857_v58 }
 0x2e6   :  { %v865_v28 = vrot.slane %v864_v22, 4 }
 0x2e8   :  { %v866_v19 = vadd.f32 %v865_v28, %v864_v22 }
 0x2ea   :  { %v867_v60 = vrot.slane %v866_v19, 2 }
 0x2ec   :  { %v868_v61 = vadd.f32 %v867_v60, %v866_v19 }
 0x2ee   :  { %v869_v51 = vrot.slane %v868_v61, 1 }
 0x2f0   :  { %v870_v10 = vadd.f32 %v869_v51, %v868_v61 }
 0x2f2   :  { %v873_v17 = vadd.f32 %v872_v18, %v870_v10 }
 0x2f4   :  { %874 = vst [vmem:[#allocation3] sm:$0x1] %v873_v17 }
 0x2f5   :  { %885 = dma.vmem_to_hbm [thread:$0]  %s881_s15, 16, %s883_s7, [#allocation4]  }
 0x2f6   :  { %1044 = dma.done.wait [#allocation4], 16  }
 0x2f7   :  { %1045 = vsyncadd [#allocation4], 4294967280 }
 0x2f8   :  { %890 = vsyncpa [#allocation4], 1 }

</bundles_post_ra>
